<compile_context>
chip_gen: v7x
topology: tpu7x:2x2x1
jax: 0.10.0
libtpu: 0.0.40
codegen_flags: <defaults>
</compile_context>

<pallas_src>
import math

import jax
import jax.numpy as jnp
from jax.experimental import pallas as pl
from jax.experimental.pallas import tpu as pltpu

LN_EPS = 1e-5  # torch.nn.LayerNorm default


def _patch_merge_kernel(x_ref, wa_ref, wb_ref, bias_ref, o_ref):
    # x_ref : (tile_r, 2, W2, 2C)  -- p=0 lanes hold [x0|x2], p=1 hold [x1|x3]
    # wa_ref: (2C, 2Cout) bf16     -- gamma-folded weight rows for p=0 lanes
    # wb_ref: (2C, 2Cout) bf16     -- gamma-folded weight rows for p=1 lanes
    # bias  : (1, 2Cout)  f32      -- beta @ w_t
    # o_ref : (tile_r*W2, 2Cout)   -- flat, sublane-dense output block
    tile_r, _, w2, c2in = x_ref.shape
    m = tile_r * w2
    c4 = 2 * c2in

    x = x_ref[...].astype(jnp.float32)
    # NOTE: when W2 % 8 != 0 these reshapes may relayout inside VMEM; the op
    # is HBM-bound so the extra VPU/XLU work stays hidden.  (A manual flat DMA
    # via memory_space=ANY would remove it at the cost of per-row copies.)
    xa = x[:, 0].reshape(m, c2in)
    xb = x[:, 1].reshape(m, c2in)

    # LayerNorm statistics over the full 4C channels (split across both pieces).
    total = jnp.sum(xa, axis=-1, keepdims=True) + jnp.sum(xb, axis=-1, keepdims=True)
    mean = total * (1.0 / c4)
    ca = xa - mean
    cb = xb - mean
    var = (jnp.sum(ca * ca, axis=-1, keepdims=True)
           + jnp.sum(cb * cb, axis=-1, keepdims=True)) * (1.0 / c4)
    rstd = jax.lax.rsqrt(var + LN_EPS)

    # LN affine is folded into the weights; matmuls in bf16, accumulate in f32.
    ya = (ca * rstd).astype(wa_ref.dtype)
    yb = (cb * rstd).astype(wb_ref.dtype)
    acc = jnp.dot(ya, wa_ref[...], preferred_element_type=jnp.float32)
    acc = acc + jnp.dot(yb, wb_ref[...], preferred_element_type=jnp.float32)
    o_ref[...] = (acc + bias_ref[...]).astype(o_ref.dtype)


def _hw_params():
    """Generation-aware (vmem_limit_bytes, tiling_budget, tokens_per_step, min_grid_steps)."""
    try:
        cap = int(pltpu.get_tpu_info().vmem_capacity_bytes)
    except Exception:
        cap = None
    try:
        kind = jax.devices()[0].device_kind.lower()
    except Exception:
        kind = ""
    if cap is None:
        # Fall back on the device kind; be conservative otherwise (v7x = 64 MiB).
        big_vmem = ("v4" in kind) or ("v5" in kind) or ("v6" in kind)
        cap = (128 if big_vmem else 64) * 1024 * 1024

    is_v7 = ("7x" in kind) or (cap <= 64 * 1024 * 1024)
    vmem_limit = int(cap * 0.80)   # leave headroom for Mosaic internal scratch
    budget = int(cap * 0.60)       # tile-sizing budget (consistent with limit)
    if is_v7:
        tokens = 8192              # ~3.2 TB/s HBM: amortize ~0.35us/step overhead
        min_steps = 4              # >=2 pipelined grid steps per TensorCore (2 TCs)
    elif "v5" in kind:
        tokens = 2048
        min_steps = 2
    else:                          # v6e / default
        tokens = 4096
        min_steps = 2
    return vmem_limit, budget, tokens, min_steps


def _pick_tile_r(R, W2, C2in, C2out, in_dtype, out_dtype, budget, tokens, min_steps):
    """Rows (of W2 merged tokens each) per grid step, from a VMEM budget."""
    in_b = jnp.dtype(in_dtype).itemsize
    out_b = jnp.dtype(out_dtype).itemsize
    # Double-buffered pipelined x / out blocks, per unit of the R axis.
    per_r = 2 * (2 * W2 * C2in * in_b) + 2 * (W2 * C2out * out_b)
    # Single-copy (untiled VMEM) bf16 weights + f32 bias resident for the whole grid.
    resident = 2 * (C2in * C2out * 2) + C2out * 4
    avail = max(budget - resident, per_r)
    tile_r = max(1, avail // per_r)
    # Tokens-per-step target (generation scaled) keeps per-step overhead small
    # while sitting on the HBM-roofline plateau.
    tile_r = min(tile_r, max(1, tokens // max(W2, 1)))
    # Keep >= min_steps grid steps so each TensorCore gets >= 2 pipelined steps.
    tile_r = min(tile_r, max(1, -(-R // min_steps)))
    tile_r = int(min(tile_r, R))
    if tile_r >= R:
        return R  # single full block: flat output block equals the full dim -> legal
    # Flat output block (tile_r*W2, 2Cout) needs tile_r*W2 % 8 == 0.
    m8 = 8 // math.gcd(W2, 8)
    tile_r = max(m8, (tile_r // m8) * m8)
    return R if tile_r >= R else int(tile_r)


def _run_fused(x4, wa, wb, bias, tile_r, vmem_limit, out_dtype):
    R, _, W2, C2in = x4.shape
    C2out = wa.shape[1]
    grid = (pl.cdiv(R, tile_r),)
    return pl.pallas_call(
        _patch_merge_kernel,
        out_shape=jax.ShapeDtypeStruct((R * W2, C2out), out_dtype),
        grid_spec=pltpu.PrefetchScalarGridSpec(
            num_scalar_prefetch=0,
            grid=grid,
            in_specs=[
                pl.BlockSpec((tile_r, 2, W2, C2in), lambda r: (r, 0, 0, 0)),
                # Constant operands: whole array resident in VMEM (no useless
                # double-buffering of the weights / bias).
                pl.BlockSpec(memory_space=pltpu.MemorySpace.VMEM),
                pl.BlockSpec(memory_space=pltpu.MemorySpace.VMEM),
                pl.BlockSpec(memory_space=pltpu.MemorySpace.VMEM),
            ],
            # Flat, sublane-dense output block: tile_r*W2 % 8 == 0 (or full).
            out_specs=pl.BlockSpec((tile_r * W2, C2out), lambda r: (r, 0)),
        ),
        compiler_params=pltpu.CompilerParams(
            dimension_semantics=("parallel",),
            vmem_limit_bytes=vmem_limit,
        ),
    )(x4, wa, wb, bias)


def patch_merging_forward(x, H, W, gamma, beta, w_t):
    """
    x:      (B, H*W, C)   float32 or bfloat16
    gamma:  (4*C,)        LayerNorm weight
    beta:   (4*C,)        LayerNorm bias
    w_t:    (4*C, 2*C)    reduction weight, already transposed to (in, out)
    Returns (B, ceil(H/2)*ceil(W/2), 2*C), new H, new W.
    """
    B, L, C = x.shape
    assert L == H * W, "Input feature has wrong size"

    x = x.reshape(B, H, W, C)
    if H % 2 == 1 or W % 2 == 1:
        # Matches torch.nn.functional.pad: zero pixels enter the LN stats of
        # border merged tokens, same as the PyTorch module.
        x = jnp.pad(x, ((0, 0), (0, H % 2), (0, W % 2), (0, 0)))
    Hp, Wp = x.shape[1], x.shape[2]
    H2, W2 = Hp // 2, Wp // 2
    R = B * H2
    C2out = w_t.shape[1]

    # Layout-preserving (free) view: (B, Hp, Wp, C) -> (B*H2, 2, W2, 2*C).
    # piece p=0 lanes = [x0 | x2] channels, piece p=1 lanes = [x1 | x3].
    x4 = x.reshape(R, 2, W2, 2 * C)

    # Fold the LayerNorm affine into the reduction weight / bias, reordering
    # weight rows to the kernel lane layout (torch channel order [x0,x1,x2,x3]).
    w_eff = gamma[:, None].astype(jnp.float32) * w_t.astype(jnp.float32)
    wa = jnp.concatenate([w_eff[0:C], w_eff[2 * C:3 * C]], axis=0).astype(jnp.bfloat16)
    wb = jnp.concatenate([w_eff[C:2 * C], w_eff[3 * C:4 * C]], axis=0).astype(jnp.bfloat16)
    bias = (beta.astype(jnp.float32) @ w_t.astype(jnp.float32)).reshape(1, C2out)

    vmem_limit, budget, tokens, min_steps = _hw_params()
    tile_r = _pick_tile_r(R, W2, 2 * C, C2out, x.dtype, x.dtype,
                          budget, tokens, min_steps)
    out = _run_fused(x4, wa, wb, bias, tile_r, vmem_limit, x.dtype)  # (R*W2, 2Cout)
    return out.reshape(B, H2 * W2, C2out), H2, W2


def _reference(x, H, W, gamma, beta, w_t):
    B, L, C = x.shape
    x = x.reshape(B, H, W, C)
    if H % 2 == 1 or W % 2 == 1:
        x = jnp.pad(x, ((0, 0), (0, H % 2), (0, W % 2), (0, 0)))
    x0 = x[:, 0::2, 0::2, :]
    x1 = x[:, 1::2, 0::2, :]
    x2 = x[:, 0::2, 1::2, :]
    x3 = x[:, 1::2, 1::2, :]
    xm = jnp.concatenate([x0, x1, x2, x3], axis=-1).reshape(B, -1, 4 * C)
    mean = jnp.mean(xm, axis=-1, keepdims=True)
    var = jnp.mean((xm - mean) ** 2, axis=-1, keepdims=True)
    xn = (xm - mean) / jnp.sqrt(var + LN_EPS)
    y = xn * gamma + beta
    return y @ w_t


def _run_case(key, B, H, W, C, dtype, atol):
    k_x, k_w, k_g, k_b = jax.random.split(key, 4)
    x = jax.random.normal(k_x, (B, H * W, C), dtype=jnp.float32)
    gamma = 1.0 + 0.1 * jax.random.normal(k_g, (4 * C,), dtype=jnp.float32)
    beta = 0.1 * jax.random.normal(k_b, (4 * C,), dtype=jnp.float32)
    # nn.Linear(4*dim, 2*dim, bias=False): weight (2C, 4C); kernel uses its transpose.
    w = jax.random.normal(k_w, (2 * C, 4 * C), dtype=jnp.float32) * 0.05
    w_t = w.T  # (4C, 2C)

    x_in = x.astype(dtype)
    fwd = jax.jit(patch_merging_forward, static_argnums=(1, 2))
    out, Hn, Wn = fwd(x_in, H, W, gamma, beta, w_t)
    out = jax.block_until_ready(out)

    H2, W2 = (H + 1) // 2, (W + 1) // 2
    assert out.shape == (B, H2 * W2, 2 * C), (out.shape, (B, H2 * W2, 2 * C))
    assert int(Hn) == H2 and int(Wn) == W2

    ref = _reference(x_in.astype(jnp.float32), H, W, gamma, beta, w_t)
    assert jnp.allclose(out.astype(jnp.float32), ref, atol=atol, rtol=atol), (
        f"mismatch: B={B} H={H} W={W} C={C} dtype={dtype}")


if __name__ == "__main__":
    key = jax.random.PRNGKey(0)
    keys = jax.random.split(key, 4)

    # Base case from the module spec: dim=4, input_resolution=(16, 16).
    _run_case(keys[0], B=2, H=16, W=16, C=4, dtype=jnp.float32, atol=2e-2)
    # W2 = 7 (not a multiple of 8): exercises tile rounding / flat-store path.
    _run_case(keys[1], B=2, H=14, W=14, C=8, dtype=jnp.float32, atol=2e-2)
    # Odd H / W: exercises the zero-padding path.
    _run_case(keys[2], B=2, H=7, W=9, C=8, dtype=jnp.float32, atol=2e-2)
    # bf16 activations: bf16 HBM I/O, f32 LN math inside the kernel.
    _run_case(keys[3], B=2, H=16, W=16, C=4, dtype=jnp.bfloat16, atol=5e-2)

    print("KERNEL_OK")
</pallas_src>

<mosaic_0001>
module attributes {stable_mosaic.version = 11 : i64} {
  func.func @_patch_merge_kernel(%arg0: i32, %arg1: memref<4x2x8x8xf32, #tpu.memory_space<vmem>>, %arg2: memref<8x8xbf16, #tpu.memory_space<vmem>>, %arg3: memref<8x8xbf16, #tpu.memory_space<vmem>>, %arg4: memref<1x8xf32, #tpu.memory_space<vmem>>, %arg5: memref<32x8xf32, #tpu.memory_space<vmem>>) attributes {dimension_semantics = [#tpu.dimension_semantics<parallel>], iteration_bounds = array<i64: 4>, scalar_prefetch = 0 : i64, scratch_operands = 0 : i64, tpu.core_type = #tpu.core_type<tc>, window_params = [{transform_indices = @transform_0, window_bounds = array<i64: 4, 2, 8, 8>}, {pipeline_mode = #tpu.pipeline_mode<synchronous>, transform_indices = @transform_1, window_bounds = array<i64: 8, 8>}, {pipeline_mode = #tpu.pipeline_mode<synchronous>, transform_indices = @transform_2, window_bounds = array<i64: 8, 8>}, {pipeline_mode = #tpu.pipeline_mode<synchronous>, transform_indices = @transform_3, window_bounds = array<i64: 1, 8>}, {transform_indices = @transform_4, window_bounds = array<i64: 32, 8>}]} {
    %c0 = arith.constant 0 : index
    %c0_0 = arith.constant 0 : index
    %c0_1 = arith.constant 0 : index
    %c0_2 = arith.constant 0 : index
    %0 = vector.load %arg1[%c0, %c0_0, %c0_1, %c0_2] : memref<4x2x8x8xf32, #tpu.memory_space<vmem>>, vector<4x2x8x8xf32>
    %1 = vector.extract_strided_slice %0 {offsets = [0, 0, 0, 0], sizes = [4, 1, 8, 8], strides = [1, 1, 1, 1]} : vector<4x2x8x8xf32> to vector<4x1x8x8xf32>
    %2 = vector.shape_cast %1 : vector<4x1x8x8xf32> to vector<4x8x8xf32>
    %3 = vector.shape_cast %2 : vector<4x8x8xf32> to vector<32x8xf32>
    %4 = vector.extract_strided_slice %0 {offsets = [0, 1, 0, 0], sizes = [4, 1, 8, 8], strides = [1, 1, 1, 1]} : vector<4x2x8x8xf32> to vector<4x1x8x8xf32>
    %5 = vector.shape_cast %4 : vector<4x1x8x8xf32> to vector<4x8x8xf32>
    %6 = vector.shape_cast %5 : vector<4x8x8xf32> to vector<32x8xf32>
    %cst = arith.constant dense<0.000000e+00> : vector<32xf32>
    %7 = vector.multi_reduction <add>, %3, %cst [1] : vector<32x8xf32> to vector<32xf32>
    %8 = vector.shape_cast %7 : vector<32xf32> to vector<32x1xf32>
    %cst_3 = arith.constant dense<0.000000e+00> : vector<32xf32>
    %9 = vector.multi_reduction <add>, %6, %cst_3 [1] : vector<32x8xf32> to vector<32xf32>
    %10 = vector.shape_cast %9 : vector<32xf32> to vector<32x1xf32>
    %11 = arith.addf %8, %10 : vector<32x1xf32>
    %cst_4 = arith.constant 6.250000e-02 : f32
    %12 = vector.broadcast %cst_4 : f32 to vector<32x1xf32>
    %13 = arith.mulf %11, %12 : vector<32x1xf32>
    %14 = vector.broadcast %13 : vector<32x1xf32> to vector<32x8xf32>
    %15 = arith.subf %3, %14 : vector<32x8xf32>
    %16 = vector.broadcast %13 : vector<32x1xf32> to vector<32x8xf32>
    %17 = arith.subf %6, %16 : vector<32x8xf32>
    %18 = arith.mulf %15, %15 : vector<32x8xf32>
    %cst_5 = arith.constant dense<0.000000e+00> : vector<32xf32>
    %19 = vector.multi_reduction <add>, %18, %cst_5 [1] : vector<32x8xf32> to vector<32xf32>
    %20 = vector.shape_cast %19 : vector<32xf32> to vector<32x1xf32>
    %21 = arith.mulf %17, %17 : vector<32x8xf32>
    %cst_6 = arith.constant dense<0.000000e+00> : vector<32xf32>
    %22 = vector.multi_reduction <add>, %21, %cst_6 [1] : vector<32x8xf32> to vector<32xf32>
    %23 = vector.shape_cast %22 : vector<32xf32> to vector<32x1xf32>
    %24 = arith.addf %20, %23 : vector<32x1xf32>
    %cst_7 = arith.constant 6.250000e-02 : f32
    %25 = vector.broadcast %cst_7 : f32 to vector<32x1xf32>
    %26 = arith.mulf %24, %25 : vector<32x1xf32>
    %cst_8 = arith.constant 9.99999974E-6 : f32
    %27 = vector.broadcast %cst_8 : f32 to vector<32x1xf32>
    %28 = arith.addf %26, %27 : vector<32x1xf32>
    %29 = math.rsqrt %28 : vector<32x1xf32>
    %30 = vector.broadcast %29 : vector<32x1xf32> to vector<32x8xf32>
    %31 = arith.mulf %15, %30 : vector<32x8xf32>
    %32 = arith.truncf %31 : vector<32x8xf32> to vector<32x8xbf16>
    %33 = vector.broadcast %29 : vector<32x1xf32> to vector<32x8xf32>
    %34 = arith.mulf %17, %33 : vector<32x8xf32>
    %35 = arith.truncf %34 : vector<32x8xf32> to vector<32x8xbf16>
    %c0_9 = arith.constant 0 : index
    %c0_10 = arith.constant 0 : index
    %36 = vector.load %arg2[%c0_9, %c0_10] : memref<8x8xbf16, #tpu.memory_space<vmem>>, vector<8x8xbf16>
    %cst_11 = arith.constant dense<0.000000e+00> : vector<32x8xf32>
    %37 = tpu.matmul %32, %36, %cst_11 {dimension_numbers = #tpu.dot_dimension_numbers<[1], [0], [0], [1], [0, 0, 1, 1], [], []>} : vector<32x8xbf16>, vector<8x8xbf16>, vector<32x8xf32> -> vector<32x8xf32>
    %c0_12 = arith.constant 0 : index
    %c0_13 = arith.constant 0 : index
    %38 = vector.load %arg3[%c0_12, %c0_13] : memref<8x8xbf16, #tpu.memory_space<vmem>>, vector<8x8xbf16>
    %cst_14 = arith.constant dense<0.000000e+00> : vector<32x8xf32>
    %39 = tpu.matmul %35, %38, %cst_14 {dimension_numbers = #tpu.dot_dimension_numbers<[1], [0], [0], [1], [0, 0, 1, 1], [], []>} : vector<32x8xbf16>, vector<8x8xbf16>, vector<32x8xf32> -> vector<32x8xf32>
    %40 = arith.addf %37, %39 : vector<32x8xf32>
    %c0_15 = arith.constant 0 : index
    %c0_16 = arith.constant 0 : index
    %41 = vector.load %arg4[%c0_15, %c0_16] : memref<1x8xf32, #tpu.memory_space<vmem>>, vector<1x8xf32>
    %42 = vector.broadcast %41 : vector<1x8xf32> to vector<32x8xf32>
    %43 = arith.addf %40, %42 : vector<32x8xf32>
    %c0_17 = arith.constant 0 : index
    %c0_18 = arith.constant 0 : index
    %44 = vector.load %arg5[%c0_17, %c0_18] : memref<32x8xf32, #tpu.memory_space<vmem>>, vector<32x8xf32>
    tpu.vector_store %arg5[%c0_17, %c0_18], %43 {strides = array<i32>} : memref<32x8xf32, #tpu.memory_space<vmem>>, vector<32x8xf32>,
    return
  }
  func.func @transform_0(%arg0: i32) -> (i32, i32, i32, i32) {
    %c0_i32 = arith.constant 0 : i32
    %c0_i32_0 = arith.constant 0 : i32
    %c0_i32_1 = arith.constant 0 : i32
    %c0_i32_2 = arith.constant 0 : i32
    return %arg0, %c0_i32, %c0_i32_0, %c0_i32_1 : i32, i32, i32, i32
  }
  func.func @transform_1(%arg0: i32) -> (i32, i32) {
    %c0_i32 = arith.constant 0 : i32
    %c0_i32_0 = arith.constant 0 : i32
    %c0_i32_1 = arith.constant 0 : i32
    return %c0_i32, %c0_i32_0 : i32, i32
  }
  func.func @transform_2(%arg0: i32) -> (i32, i32) {
    %c0_i32 = arith.constant 0 : i32
    %c0_i32_0 = arith.constant 0 : i32
    %c0_i32_1 = arith.constant 0 : i32
    return %c0_i32, %c0_i32_0 : i32, i32
  }
  func.func @transform_3(%arg0: i32) -> (i32, i32) {
    %c0_i32 = arith.constant 0 : i32
    %c0_i32_0 = arith.constant 0 : i32
    %c0_i32_1 = arith.constant 0 : i32
    return %c0_i32, %c0_i32_0 : i32, i32
  }
  func.func @transform_4(%arg0: i32) -> (i32, i32) {
    %c0_i32 = arith.constant 0 : i32
    %c0_i32_0 = arith.constant 0 : i32
    return %arg0, %c0_i32 : i32, i32
  }
}

</mosaic_0001>

<bundles_post_ra>
// kernel: patch_merging_forward.1
= control target key start
LH: loop header
LB: loop body
LE: loop exit
PB: predicated region body
PF: predicated region fallthrough
CT: control target
= control target key end

     0   :  { %s595_s15 = smov 0   ;;  %s679_s0 = inlined_call_operand.vmem [shape: f32[16,2,8,8], index: 0, kind: input, shape index: {}]   ;;  %s680_s1 = inlined_call_operand.vmem [shape: bf16[8,8], index: 1, kind: input, shape index: {}]   ;;  %s681_s2 = inlined_call_operand.vmem [shape: bf16[8,8], index: 2, kind: input, shape index: {}]   ;;  %s682_s3 = inlined_call_operand.vmem [shape: f32[1,8], index: 3, kind: input, shape index: {}]   ;;  %s683_s4 = inlined_call_operand.vmem [shape: f32[128,8], index: 4, kind: output, shape index: {}]  }
   0x1 LB: > { %s504_s16 = sadd.s32 4294967295, %s568_s15   ;;  %p508_p0 = scmp.ge.s32.totalorder %s568_s15, 1  ;;  %s568_s15 = sphi %s595_s15, %s14_s15  }
   0x2   : > { %p164_p1 = scmp.lt.s32.totalorder %s568_s15, 5 }
   0x4   : > { %p165_p2 = pnand %p508_p0, %p164_p1 }
   0x5   : > { %s509_s17 = sshll.u32 (!%p165_p2), %s504_s16, 2  ;;  %vm213_vm0 = vcmask (!%p165_p2), 64512   ;;  %v315_v56 = vld [vmem:[%s681_s2] sm:$0xf] (!%p165_p2)  ;;  %vm322_vm1 = vcmask (!%p165_p2), 1043456  }
   0x6   : > { %168 = sbr.rel (%p165_p2) target bundleno = 569 (0x239), region = 36  ;;  %p192_p3 = scmp.lt.s32.totalorder (!%p165_p2), %s509_s17, 15  ;;  %v314_v57 = vld [vmem:[%s680_s1] sm:$0xf] (!%p165_p2)  ;;  %544 = vmatprep.subr.msk.bf16.mxu1 (!%p165_p2), %vm322_vm1, %v315_v56  ;;  %v324_v58 = vsel (!%p165_p2), %vm322_vm1, %v315_v56, 0 }
   0x7   : > { %545 = vmatprep.subr.msk.bf16.mxu0 (!%p165_p2), %vm322_vm1, %v314_v57  ;;  %v382_v59 = vsel (!%p165_p2), %vm322_vm1, %v314_v57, 0  ;;  %529 = vmatpush3.bf16.msra.mxu1 (!%p165_p2), %v324_v58 }
   0x8   : > { %535 = vmatpush3.bf16.msra.mxu0 (!%p165_p2), %v382_v59 }
   0xd   : > { %s685_s17 = smov (!%p192_p3, %s509_s17), 15 }
   0xe   : > { %s521_s18 = sshll.u32 %s685_s17, 4  ;;  %s513_s26 = sshll.u32 %s685_s17, 3 }
   0xf   : > { %s196_s21 = scalar_lea.vmem %s679_s0, %s521_s18  ;;  %s202_s5 = scalar_lea.vmem %s683_s4, %s513_s26 }
  0x10   : > { %v206_v0 = vld [vmem:[%s196_s21 + $0x8] sm:$0xff]  ;;  %v205_v1 = vld [vmem:[%s196_s21] sm:$0xff]  ;;  %v208_v2 = vld [vmem:[%s196_s21 + $0x18] sm:$0xff] }
  0x11   : > { %v226_v3 = vsel %vm213_vm0, %v206_v0, 0.0  ;;  %v214_v4 = vsel %vm213_vm0, %v205_v1, 0.0  ;;  %v207_v5 = vld [vmem:[%s196_s21 + $0x10] sm:$0xff]  ;;  %v229_v6 = vsel %vm213_vm0, %v208_v2, 0.0  ;;  %v209_v9 = vld [vmem:[%s196_s21 + $0x20] sm:$0xff]  ;;  %v212_v12 = vld [vmem:[%s196_s21 + $0x38] sm:$0xff] }
  0x12   : > { %227 = vadd.xlane.f32.xlu1 %v226_v3  ;;  %215 = vadd.xlane.f32.xlu0 %v214_v4  ;;  %v217_v7 = vsel %vm213_vm0, %v207_v5, 0.0  ;;  %v211_v8 = vld [vmem:[%s196_s21 + $0x30] sm:$0xff]  ;;  %v220_v11 = vsel %vm213_vm0, %v209_v9, 0.0  ;;  %v210_v13 = vld [vmem:[%s196_s21 + $0x28] sm:$0xff]  ;;  %v235_v14 = vsel %vm213_vm0, %v212_v12, 0.0 }
  0x13   : > { %v223_v10 = vsel %vm213_vm0, %v211_v8, 0.0  ;;  %v232_v15 = vsel %vm213_vm0, %v210_v13, 0.0 }
  0x16   : > { %230 = vadd.xlane.f32.xlu1 %v229_v6  ;;  %218 = vadd.xlane.f32.xlu0 %v217_v7 }
  0x1a   : > { %224 = vadd.xlane.f32.xlu1 %v223_v10  ;;  %221 = vadd.xlane.f32.xlu0 %v220_v11 }
  0x1e   : > { %236 = vadd.xlane.f32.xlu1 %v235_v14  ;;  %233 = vadd.xlane.f32.xlu0 %v232_v15 }
  0x9f   : > { %v228_v16 = vpop.xlane.xlu1 %227  ;;  %v216_v17 = vpop.xlane.xlu0 %215 }
  0xa0   : > { %v238_v18 = vadd.f32 %v228_v16, %v216_v17 }
  0xa2   : > { %v242_v19 = vmul.f32 0.0625, %v238_v18 }
  0xa3   : > { %v231_v20 = vpop.xlane.xlu1 %230  ;;  %v219_v21 = vpop.xlane.xlu0 %218 }
  0xa4   : > { %v617_v22 = vsub.f32 %v205_v1, %v242_v19  ;;  %v619_v23 = vsub.f32 %v206_v0, %v242_v19  ;;  %v239_v24 = vadd.f32 %v231_v20, %v219_v21 }
  0xa6   : > { %v243_v25 = vmul.f32 0.0625, %v239_v24  ;;  %v254_v26 = vmul.f32 %v617_v22, %v617_v22  ;;  %v270_v32 = vmul.f32 %v619_v23, %v619_v23 }
  0xa7   : > { %v225_v27 = vpop.xlane.xlu1 %224  ;;  %v222_v28 = vpop.xlane.xlu0 %221 }
  0xa8   : > { %v623_v29 = vsub.f32 %v207_v5, %v243_v25  ;;  %v625_v30 = vsub.f32 %v208_v2, %v243_v25  ;;  %v258_v31 = vsel %vm213_vm0, %v254_v26, 0.0  ;;  %v274_v39 = vsel %vm213_vm0, %v270_v32, 0.0 }
  0xa9   : > { %259 = vadd.xlane.f32.xlu0 %v258_v31 }
  0xaa   : > { %v255_v33 = vmul.f32 %v623_v29, %v623_v29  ;;  %v271_v36 = vmul.f32 %v625_v30, %v625_v30 }
  0xab   : > { %v237_v34 = vpop.xlane.xlu1 %236  ;;  %v234_v35 = vpop.xlane.xlu0 %233 }
  0xac   : > { %v241_v37 = vadd.f32 %v237_v34, %v225_v27  ;;  %v240_v38 = vadd.f32 %v234_v35, %v222_v28  ;;  %v261_v40 = vsel %vm213_vm0, %v255_v33, 0.0  ;;  %v277_v43 = vsel %vm213_vm0, %v271_v36, 0.0  ;;  %v518_v34 = vld [vmem:[%s682_s3] ss:$0 sm:$0xff] }
  0xad   : > { %275 = vadd.xlane.f32.xlu0 %v274_v39  ;;  %262 = vadd.xlane.f32.xlu1 %v261_v40 }
  0xae   : > { %v245_v41 = vmul.f32 0.0625, %v241_v37  ;;  %v244_v42 = vmul.f32 0.0625, %v240_v38 }
  0xb0   : > { %v637_v44 = vsub.f32 %v211_v8, %v245_v41  ;;  %v253_v45 = vsub.f32 %v212_v12, %v245_v41  ;;  %v639_v46 = vsub.f32 %v209_v9, %v244_v42  ;;  %v252_v47 = vsub.f32 %v210_v13, %v244_v42 }
  0xb1   : > { %278 = vadd.xlane.f32.xlu1 %v277_v43 }
  0xb2   : > { %v257_v48 = vmul.f32 %v637_v44, %v637_v44  ;;  %v256_v49 = vmul.f32 %v639_v46, %v639_v46  ;;  %v273_v52 = vmul.f32 %v253_v45, %v253_v45  ;;  %v272_v53 = vmul.f32 %v252_v47, %v252_v47 }
  0xb4   : > { %v267_v50 = vsel %vm213_vm0, %v257_v48, 0.0  ;;  %v264_v51 = vsel %vm213_vm0, %v256_v49, 0.0  ;;  %v283_v54 = vsel %vm213_vm0, %v273_v52, 0.0  ;;  %v280_v55 = vsel %vm213_vm0, %v272_v53, 0.0 }
  0xb5   : > { %268 = vadd.xlane.f32.xlu1 %v267_v50  ;;  %265 = vadd.xlane.f32.xlu0 %v264_v51 }
  0xb9   : > { %284 = vadd.xlane.f32.xlu1 %v283_v54  ;;  %281 = vadd.xlane.f32.xlu0 %v280_v55 }
 0x136   : > { %v260_v60 = vpop.xlane.xlu0 %259 }
 0x13a   : > { %v263_v61 = vpop.xlane.xlu1 %262  ;;  %v276_v62 = vpop.xlane.xlu0 %275 }
 0x13b   : > { %v286_v63 = vadd.f32 %v276_v62, %v260_v60 }
 0x13d   : > { %v290_v0 = vmul.f32 0.0625, %v286_v63 }
 0x13e   : > { %v279_v1 = vpop.xlane.xlu1 %278 }
 0x13f   : > { %v294_v2 = vadd.f32 1e-05, %v290_v0  ;;  %v287_v3 = vadd.f32 %v279_v1, %v263_v61 }
 0x141   : > { %v291_v4 = vmul.f32 0.0625, %v287_v3  ;;  %554 = vrsqrt.f32 %v294_v2 }
 0x142   : > { %v269_v5 = vpop.xlane.xlu1 %268  ;;  %v266_v6 = vpop.xlane.xlu0 %265 }
 0x143   : > { %v295_v7 = vadd.f32 1e-05, %v291_v4 }
 0x145   : > { %556 = vrsqrt.f32 %v295_v7 }
 0x146   : > { %v285_v8 = vpop.xlane.xlu1 %284  ;;  %v282_v9 = vpop.xlane.xlu0 %281 }
 0x147   : > { %v289_v10 = vadd.f32 %v285_v8, %v269_v5  ;;  %v288_v11 = vadd.f32 %v282_v9, %v266_v6 }
 0x149   : > { %v293_v12 = vmul.f32 0.0625, %v289_v10  ;;  %v292_v13 = vmul.f32 0.0625, %v288_v11 }
 0x14b   : > { %v297_v14 = vadd.f32 1e-05, %v293_v12  ;;  %v296_v15 = vadd.f32 1e-05, %v292_v13  ;;  %v555_v16 = vpop.eup %554 }
 0x14c   : > { %v308_v18 = vmul.f32 %v555_v16, %v619_v23  ;;  %v302_v20 = vmul.f32 %v555_v16, %v617_v22 }
 0x14d   : > { %558 = vrsqrt.f32 %v297_v14 }
 0x14e   : > { %560 = vrsqrt.f32 %v296_v15 }
 0x14f   : > { %v557_v17 = vpop.eup %556 }
 0x150   : > { %v309_v19 = vmul.f32 %v557_v17, %v625_v30  ;;  %v303_v21 = vmul.f32 %v557_v17, %v623_v29 }
 0x152   : > { %v312_v24 = vpack.c.bf16 %v309_v19, %v308_v18  ;;  %v306_v25 = vpack.c.bf16 %v303_v21, %v302_v20 }
 0x154   : > { %530 = vmatprep.mubr.msk.bf16.mxu1 %vm213_vm0, %v312_v24  ;;  %536 = vmatprep.mubr.msk.bf16.mxu0 %vm213_vm0, %v306_v25 }
 0x157   : > { %v559_v26 = vpop.eup %558 }
 0x158   : > { %v561_v27 = vpop.eup %560  ;;  %v311_v28 = vmul.f32 %v559_v26, %v253_v45  ;;  %v305_v31 = vmul.f32 %v559_v26, %v637_v44 }
 0x159   : > { %v310_v32 = vmul.f32 %v561_v27, %v252_v47  ;;  %v304_v23 = vmul.f32 %v561_v27, %v639_v46 }
 0x15b   : > { %v313_v30 = vpack.c.bf16 %v311_v28, %v310_v32  ;;  %v307_v33 = vpack.c.bf16 %v305_v31, %v304_v23 }
 0x15d   : > { %531 = vmatmul.mubr.msk.bf16.vlgmr.msra.gmra.mrb[0].mxu1 %vm213_vm0, %v313_v30  ;;  %537 = vmatmul.mubr.msk.bf16.vlgmr.msra.gmra.mrb[0].mxu0 %vm213_vm0, %v307_v33 }
 0x230   : > { %v532_v22 = vpop.f32.mrb[0].mxu1  ;;  %v538_v29 = vpop.f32.mrb[0].mxu0 }
 0x231   : > { %v427_v35 = vadd.f32 %v538_v29, %v532_v22  ;;  %v360_v36 = vpop.f32.mrb[1].mxu1  ;;  %v418_v37 = vpop.f32.mrb[1].mxu0 }
 0x232   : > { %v419_v38 = vadd.f32 %v418_v37, %v360_v36  ;;  %v533_v39 = vpop.f32.mrb[2].mxu1  ;;  %v539_v40 = vpop.f32.mrb[2].mxu0 }
 0x233   : > { %v442_v41 = vadd.f32 %v518_v34, %v427_v35  ;;  %v430_v42 = vadd.f32 %v539_v40, %v533_v39  ;;  %v363_v43 = vpop.f32.mrb[3].mxu1  ;;  %v421_v44 = vpop.f32.mrb[3].mxu0 }
 0x234   : > { %v440_v45 = vadd.f32 %v518_v34, %v419_v38  ;;  %v422_v46 = vadd.f32 %v421_v44, %v363_v43 }
 0x235   : > { %446 = vst.msk [vmem:[%s202_s5 + $0x10] sm:$0xff] %vm213_vm0, %v442_v41  ;;  %v443_v47 = vadd.f32 %v518_v34, %v430_v42 }
 0x236   : > { %444 = vst.msk [vmem:[%s202_s5] sm:$0xff] %vm213_vm0, %v440_v45  ;;  %v441_v48 = vadd.f32 %v518_v34, %v422_v46 }
 0x237   : > { %447 = vst.msk [vmem:[%s202_s5 + $0x18] sm:$0xff] %vm213_vm0, %v443_v47 }
 0x238   : > { %445 = vst.msk [vmem:[%s202_s5 + $0x8] sm:$0xff] %vm213_vm0, %v441_v48 }
 0x239 PF: > { %s14_s15 = sadd.s32 1, %s568_s15  }
 0x23a   : > { %p11_p4 = scmp.ge.s32.totalorder %s14_s15, 6  }
 0x23c   :  { %13 = sbr.rel (!%p11_p4) target bundleno = 1 (0x1), region = 66 }

</bundles_post_ra>
